<compile_context>
chip_gen: v7x
topology: tpu7x:2x2x1
jax: 0.10.0
libtpu: 0.0.40
codegen_flags: <defaults>
</compile_context>

<pallas_src>
import jax
import jax.numpy as jnp
from jax import lax
from jax.experimental import pallas as pl
from jax.experimental.pallas import tpu as pltpu


def _round_up(x, m):
    return ((x + m - 1) // m) * m


def _preferred_tile():
    """MXU-native tile edge: 256 on v6e/v7x, 128 on v5e and older."""
    try:
        kind = jax.devices()[0].device_kind.lower()
    except Exception:
        return 256
    if any(s in kind for s in ("v2", "v3", "v4", "v5 lite", "v5e", "v5lite")):
        return 128
    return 256


def _pick_tm(m, pref):
    """Row-tile (sublane granularity 8).  Returns (tm, padded_M)."""
    mp8 = _round_up(m, 8)
    if mp8 <= pref:
        return mp8, mp8
    return pref, _round_up(m, pref)


def _pick_tn(n, pref):
    """Col-tile (lane granularity 128).  Returns (tn, padded_N)."""
    np128 = _round_up(n, 128)
    if np128 <= pref:
        return np128, np128
    if np128 % pref == 0:
        return pref, np128
    return 128, np128  # avoid over-padding N when pref doesn't divide it


# ---------------------------------------------------------------------------
# Generic tiled matmul-with-bias kernel (time-parallel input-gate matmul and
# vocab projection).  K is kept whole per block (K is E or H here).
# ---------------------------------------------------------------------------
def _matmul_bias_kernel(a_ref, b_ref, bias_ref, o_ref):
    o_ref[...] = (
        jnp.dot(a_ref[...], b_ref[...], preferred_element_type=jnp.float32)
        + bias_ref[...]
    ).astype(o_ref.dtype)


def _pallas_matmul_bias(a, b, bias, *, out_dtype=jnp.float32, tile=None):
    """out = a @ b + bias   (a: (M,K) activations, b: (K,N) weights, bias: (1,N)).

    Weights/bias should be pre-padded to lane multiples (prepare_decoder_params)
    so the pads below are no-ops for them; only the activation M dim is padded
    per call.  Grid order is N-outer / M-inner so the (K, tn) weight column
    block stays VMEM-resident while activation row tiles stream past it
    (minimizes HBM re-reads of w_out at realistic vocab sizes).
    """
    M, K = a.shape
    Kb, N = b.shape
    assert K == Kb
    pref = tile if tile is not None else _preferred_tile()
    tm, Mp = _pick_tm(M, pref)
    tn, Np = _pick_tn(N, pref)

    a_p = jnp.pad(a, ((0, Mp - M), (0, 0))) if Mp != M else a
    b_p = jnp.pad(b, ((0, 0), (0, Np - N))) if Np != N else b
    bias2 = jnp.reshape(bias, (1, N))
    bias_p = jnp.pad(bias2, ((0, 0), (0, Np - N))) if Np != N else bias2

    # VMEM: 2x double-buffered blocks of a, b, bias, out (f32), 2x safety
    # margin, never below the most conservative default (16 MiB) and capped at
    # 48 MiB so v7x (64 MiB physical) keeps headroom for Mosaic scratch.
    buf_bytes = 2 * (tm * K + K * tn + tn + tm * tn) * 4
    vmem_limit = int(min(48 * 1024 * 1024, max(16 * 1024 * 1024, 2 * buf_bytes)))

    n_j = Np // tn
    n_i = Mp // tm
    flops = int(2 * Mp * Np * K)
    # a is re-streamed once per N-tile; b/bias each read once; out written once.
    bytes_accessed = int(4 * (Mp * K * n_j + K * Np + Np + Mp * Np))

    out = pl.pallas_call(
        _matmul_bias_kernel,
        out_shape=jax.ShapeDtypeStruct((Mp, Np), out_dtype),
        grid_spec=pltpu.PrefetchScalarGridSpec(
            num_scalar_prefetch=0,
            grid=(n_j, n_i),  # N outer, M inner: weight column block held
            in_specs=[
                pl.BlockSpec((tm, K), lambda j, i: (i, 0)),
                pl.BlockSpec((K, tn), lambda j, i: (0, j)),
                pl.BlockSpec((1, tn), lambda j, i: (0, j)),
            ],
            out_specs=pl.BlockSpec((tm, tn), lambda j, i: (i, j)),
        ),
        compiler_params=pltpu.CompilerParams(
            dimension_semantics=("parallel", "parallel"),
            vmem_limit_bytes=vmem_limit,
        ),
        cost_estimate=pl.CostEstimate(
            flops=flops, transcendentals=0, bytes_accessed=bytes_accessed
        ),
    )(a_p, b_p, bias_p)
    if Mp != M or Np != N:
        out = out[:M, :N]
    return out


# ---------------------------------------------------------------------------
# Sequential GRU recurrence kernel (batch-first layout).  Only the
# hidden-to-hidden matmul and the elementwise gate math live on the serial
# path.  Each grid iteration handles t_blk timesteps (unrolled fori_loop) to
# amortize the ~0.35 us per-grid-step pipeline overhead.
# ---------------------------------------------------------------------------
def _gru_recurrence_kernel(gx_ref, ctx_ref, h0_ref, w_hh_ref, b_hh_ref,
                           hseq_ref, h_scr):
    """gx_ref:  (Bp, t_blk, 3Hp)  precomputed emb @ W_ih[:E] + b_ih (this block)
       ctx_ref: (Bp, 3Hp)         h0 @ W_ih[E:], constant over time
       h0_ref:  (Bp, Hp)          initial hidden
       w_hh_ref:(Hp, 3Hp)         hidden-to-hidden weights (gate order r, z, n)
       b_hh_ref:(1, 3Hp)          hidden bias
       hseq_ref:(Bp, t_blk, Hp)   per-step hidden states, batch-first (output)
       h_scr:   (Bp, Hp) f32      recurrent carry, persists across grid steps
    """
    Hp = h_scr.shape[-1]

    @pl.when(pl.program_id(0) == 0)
    def _():
        h_scr[...] = h0_ref[...].astype(jnp.float32)

    # Hoist weight / bias / context loads out of the time loop.
    w_hh = w_hh_ref[...]
    b_hh = b_hh_ref[...]
    ctx = ctx_ref[...]
    t_blk = gx_ref.shape[1]

    def step(i, h):
        gx = gx_ref[:, pl.ds(i, 1), :][:, 0, :] + ctx          # (Bp, 3Hp)
        gh = jnp.dot(h, w_hh, preferred_element_type=jnp.float32) + b_hh
        # PyTorch GRU gate ordering: reset, update, new.
        r = jax.nn.sigmoid(gx[:, 0 * Hp:1 * Hp] + gh[:, 0 * Hp:1 * Hp])
        z = jax.nn.sigmoid(gx[:, 1 * Hp:2 * Hp] + gh[:, 1 * Hp:2 * Hp])
        n = jnp.tanh(gx[:, 2 * Hp:3 * Hp] + r * gh[:, 2 * Hp:3 * Hp])
        h_new = (1.0 - z) * n + z * h
        hseq_ref[:, pl.ds(i, 1), :] = h_new[:, None, :].astype(hseq_ref.dtype)
        return h_new

    h_scr[...] = lax.fori_loop(0, t_blk, step, h_scr[...], unroll=True)


def _gru_recurrence(gx, gx_ctx, h0, w_hh, b_hh, *, t_blk):
    """gx: (Bp, Tp, 3Hp), gx_ctx: (Bp, 3Hp), h0: (Bp, Hp),
       w_hh: (Hp, 3Hp), b_hh: (1, 3Hp)  ->  hseq (Bp, Tp, Hp), batch-first."""
    Bp, Tp, H3p = gx.shape
    Hp = h0.shape[-1]
    assert Tp % t_blk == 0

    single = pl.Buffered(1)  # constant-index operands: halve their VMEM
    buf_bytes = (2 * Bp * t_blk * H3p          # gx (double-buffered)
                 + 2 * Bp * t_blk * Hp         # hseq (double-buffered)
                 + Bp * H3p + Bp * Hp + Hp * H3p + H3p  # single-buffered consts
                 + Bp * Hp) * 4                # carry scratch
    vmem_limit = int(min(48 * 1024 * 1024,
                         max(16 * 1024 * 1024, 2 * buf_bytes)))

    flops = int(2 * Tp * Bp * Hp * H3p + 12 * Tp * Bp * Hp)
    transcendentals = int(3 * Tp * Bp * Hp)
    bytes_accessed = int(4 * (Tp * Bp * H3p + Tp * Bp * Hp
                              + Hp * H3p + H3p + Bp * Hp + Bp * H3p))

    # TODO(synk): on v7x add a batch-parallel leading grid axis
    # (dimension_semantics=("parallel", "arbitrary")) so both TensorCores run
    # independent recurrences over half the batch.
    hseq = pl.pallas_call(
        _gru_recurrence_kernel,
        out_shape=jax.ShapeDtypeStruct((Bp, Tp, Hp), jnp.float32),
        grid_spec=pltpu.PrefetchScalarGridSpec(
            num_scalar_prefetch=0,
            grid=(Tp // t_blk,),
            in_specs=[
                pl.BlockSpec((Bp, t_blk, H3p), lambda t: (0, t, 0)),      # gx
                pl.BlockSpec((Bp, H3p), lambda t: (0, 0), pipeline_mode=single),  # gx_ctx
                pl.BlockSpec((Bp, Hp), lambda t: (0, 0), pipeline_mode=single),   # h0
                pl.BlockSpec((Hp, H3p), lambda t: (0, 0), pipeline_mode=single),  # w_hh
                pl.BlockSpec((1, H3p), lambda t: (0, 0), pipeline_mode=single),   # b_hh
            ],
            out_specs=pl.BlockSpec((Bp, t_blk, Hp), lambda t: (0, t, 0)),
            scratch_shapes=[pltpu.VMEM((Bp, Hp), jnp.float32)],
        ),
        compiler_params=pltpu.CompilerParams(
            dimension_semantics=("arbitrary",),   # true recurrence over time
            vmem_limit_bytes=vmem_limit,
        ),
        cost_estimate=pl.CostEstimate(
            flops=flops, transcendentals=transcendentals,
            bytes_accessed=bytes_accessed,
        ),
    )(gx, gx_ctx, h0, w_hh, b_hh)
    return hseq


# ---------------------------------------------------------------------------
# One-time static-weight preparation (padding / gate alignment).  Call once
# outside the per-step decode loop so weight padding is not re-executed per
# forward call.
# ---------------------------------------------------------------------------
def prepare_decoder_params(params):
    emb_w = params["embedding"]                 # (V, E)
    w_ih = params["w_ih"]                       # (E+H, 3H)
    w_hh = params["w_hh"]                       # (H, 3H)
    b_ih = jnp.reshape(params["b_ih"], (1, -1))
    b_hh = jnp.reshape(params["b_hh"], (1, -1))
    w_out = params["w_out"]                     # (H, V)
    b_out = jnp.reshape(params["b_out"], (1, -1))

    V, E = emb_w.shape
    H = w_hh.shape[0]
    Hp = _round_up(H, 128)   # lane-align hidden dim (and each gate of 3H)
    Vp = _round_up(V, 128)   # lane-align vocab dim

    def pad_gate_cols(w):
        """(..., 3H) -> (..., 3Hp): zero-pad each gate block independently so
        gate slices fall on lane-tile boundaries inside the kernel."""
        lead = w.shape[:-1]
        w3 = jnp.reshape(w, lead + (3, H))
        w3 = jnp.pad(w3, [(0, 0)] * len(lead) + [(0, 0), (0, Hp - H)])
        return jnp.reshape(w3, lead + (3 * Hp,))

    w_ih_x = pad_gate_cols(w_ih[:E])                                       # (E, 3Hp)
    w_ih_h = jnp.pad(pad_gate_cols(w_ih[E:]), ((0, Hp - H), (0, 0)))       # (Hp, 3Hp)
    w_hh_p = jnp.pad(pad_gate_cols(w_hh), ((0, Hp - H), (0, 0)))           # (Hp, 3Hp)
    b_ih_p = pad_gate_cols(b_ih)                                           # (1, 3Hp)
    b_hh_p = pad_gate_cols(b_hh)                                           # (1, 3Hp)
    w_out_p = jnp.pad(w_out, ((0, Hp - H), (0, Vp - V)))                   # (Hp, Vp)
    b_out_p = jnp.pad(b_out, ((0, 0), (0, Vp - V)))                        # (1, Vp)

    return dict(embedding=emb_w, w_ih_x=w_ih_x, w_ih_h=w_ih_h, w_hh=w_hh_p,
                b_ih=b_ih_p, b_hh=b_hh_p, w_out=w_out_p, b_out=b_out_p,
                dims=dict(V=V, E=E, H=H, Hp=Hp, Vp=Vp))


# ---------------------------------------------------------------------------
# Decoder forward (PyTorch batch-first convention at the boundary).
# ---------------------------------------------------------------------------
def decoder_forward(X_tokens, state, prep, *, t_blk=8):
    """X_tokens: (B, T) int32 token ids
       state   : (1, B, H) f32 encoder hidden
       prep    : output of prepare_decoder_params(params)
       returns : (logits (B, T, V), new_state (1, B, H))
    """
    d = prep["dims"]
    V, H, Hp, Vp = d["V"], d["H"], d["Hp"], d["Vp"]
    B, T = X_tokens.shape
    E = prep["w_ih_x"].shape[0]

    Bp = _round_up(B, 8)
    t_blk = max(1, min(t_blk, T))
    Tp = _round_up(T, t_blk)

    h0 = state[-1]                                              # (B, H)
    h0_p = jnp.pad(h0, ((0, Bp - B), (0, Hp - H)))              # (Bp, Hp)

    # ---- plain-JAX glue: embedding gather (data-dependent, left to XLA) ----
    emb = prep["embedding"][X_tokens]                           # (B, T, E)

    # ---- hoisted, time-parallel input-gate matmul (Pallas) ----
    gx_emb = _pallas_matmul_bias(emb.reshape(B * T, E),
                                 prep["w_ih_x"], prep["b_ih"])  # (B*T, 3Hp)
    gx = gx_emb.reshape(B, T, 3 * Hp)
    if Bp != B or Tp != T:
        gx = jnp.pad(gx, ((0, Bp - B), (0, Tp - T), (0, 0)))    # (Bp, Tp, 3Hp)

    # context == h0 is constant over T -> a single small matmul (XLA); its
    # addition is folded into the recurrence kernel (no (T,B,3H) HBM pass).
    gx_ctx = jnp.dot(h0_p, prep["w_ih_h"],
                     preferred_element_type=jnp.float32)        # (Bp, 3Hp)

    # ---- sequential GRU recurrence (only h @ W_hh stays on the serial path) --
    hseq = _gru_recurrence(gx, gx_ctx, h0_p, prep["w_hh"], prep["b_hh"],
                           t_blk=t_blk)                         # (Bp, Tp, Hp)

    # ---- hoisted, time-parallel output projection (Pallas) ----
    # hseq is already batch-first, so no transpose of hseq or of the logits.
    hseq_bt = hseq[:B, :T]                                      # (B, T, Hp)
    logits_flat = _pallas_matmul_bias(hseq_bt.reshape(B * T, Hp),
                                      prep["w_out"], prep["b_out"])  # (B*T, Vp)
    logits = logits_flat.reshape(B, T, Vp)
    if Vp != V:
        logits = logits[..., :V]                                # (B, T, V)

    new_state = hseq_bt[:, T - 1, :H][None]                     # (1, B, H)
    return logits, new_state


# ---------------------------------------------------------------------------
# Pure-JAX reference for correctness checking.
# ---------------------------------------------------------------------------
def _reference_forward(X_tokens, state, params):
    emb = params["embedding"][X_tokens]
    emb = jnp.transpose(emb, (1, 0, 2))
    T, B, E = emb.shape
    H = params["w_hh"].shape[0]
    ctx = jnp.broadcast_to(state[-1], (T, B, H))
    x_cat = jnp.concatenate([emb, ctx], axis=-1)

    def step(h, x):
        gx = x @ params["w_ih"] + params["b_ih"]
        gh = h @ params["w_hh"] + params["b_hh"]
        r = jax.nn.sigmoid(gx[:, 0 * H:1 * H] + gh[:, 0 * H:1 * H])
        z = jax.nn.sigmoid(gx[:, 1 * H:2 * H] + gh[:, 1 * H:2 * H])
        n = jnp.tanh(gx[:, 2 * H:3 * H] + r * gh[:, 2 * H:3 * H])
        h_new = (1.0 - z) * n + z * h
        return h_new, h_new @ params["w_out"] + params["b_out"]

    h_final, outs = jax.lax.scan(step, state[-1], x_cat)
    return jnp.transpose(outs, (1, 0, 2)), h_final[None]


if __name__ == "__main__":
    # Small deterministic shapes.
    B, T = 2, 8            # batch, target sequence length
    V, E, H = 32, 16, 32   # vocab, embedding dim, GRU hidden dim

    key = jax.random.PRNGKey(0)
    ks = jax.random.split(key, 8)
    params = {
        "embedding": jax.random.normal(ks[0], (V, E), jnp.float32) * 0.1,
        "w_ih": jax.random.normal(ks[1], (E + H, 3 * H), jnp.float32) * 0.1,
        "w_hh": jax.random.normal(ks[2], (H, 3 * H), jnp.float32) * 0.1,
        "b_ih": jax.random.normal(ks[3], (1, 3 * H), jnp.float32) * 0.1,
        "b_hh": jax.random.normal(ks[4], (1, 3 * H), jnp.float32) * 0.1,
        "w_out": jax.random.normal(ks[5], (H, V), jnp.float32) * 0.1,
        "b_out": jax.random.normal(ks[6], (1, V), jnp.float32) * 0.1,
    }

    X_tokens = jax.random.randint(ks[7], (B, T), 0, V, dtype=jnp.int32)
    state = jax.random.normal(key, (1, B, H), jnp.float32)   # encoder hidden

    prep = prepare_decoder_params(params)   # one-time static weight padding
    logits, new_state = decoder_forward(X_tokens, state, prep)
    jax.block_until_ready((logits, new_state))

    ref_logits, ref_state = _reference_forward(X_tokens, state, params)
    assert logits.shape == (B, T, V) and new_state.shape == (1, B, H)
    assert jnp.allclose(logits, ref_logits, atol=1e-4, rtol=1e-4)
    assert jnp.allclose(new_state, ref_state, atol=1e-4, rtol=1e-4)

    print("KERNEL_OK")
</pallas_src>

<mosaic_0001>
module attributes {stable_mosaic.version = 11 : i64} {
  func.func @_matmul_bias_kernel(%arg0: i32, %arg1: i32, %arg2: memref<16x16xf32, #tpu.memory_space<vmem>>, %arg3: memref<16x128xf32, #tpu.memory_space<vmem>>, %arg4: memref<1x128xf32, #tpu.memory_space<vmem>>, %arg5: memref<16x128xf32, #tpu.memory_space<vmem>>) attributes {dimension_semantics = [#tpu.dimension_semantics<parallel>, #tpu.dimension_semantics<parallel>], iteration_bounds = array<i64: 3, 1>, scalar_prefetch = 0 : i64, scratch_operands = 0 : i64, tpu.core_type = #tpu.core_type<tc>, window_params = [{transform_indices = @transform_0, window_bounds = array<i64: 16, 16>}, {transform_indices = @transform_1, window_bounds = array<i64: 16, 128>}, {transform_indices = @transform_2, window_bounds = array<i64: 1, 128>}, {transform_indices = @transform_3, window_bounds = array<i64: 16, 128>}]} {
    %c0 = arith.constant 0 : index
    %c0_0 = arith.constant 0 : index
    %0 = vector.load %arg2[%c0, %c0_0] : memref<16x16xf32, #tpu.memory_space<vmem>>, vector<16x16xf32>
    %c0_1 = arith.constant 0 : index
    %c0_2 = arith.constant 0 : index
    %1 = vector.load %arg3[%c0_1, %c0_2] : memref<16x128xf32, #tpu.memory_space<vmem>>, vector<16x128xf32>
    %cst = arith.constant dense<0.000000e+00> : vector<16x128xf32>
    %2 = tpu.matmul %0, %1, %cst {dimension_numbers = #tpu.dot_dimension_numbers<[1], [0], [0], [1], [0, 0, 1, 1], [], []>} : vector<16x16xf32>, vector<16x128xf32>, vector<16x128xf32> -> vector<16x128xf32>
    %c0_3 = arith.constant 0 : index
    %c0_4 = arith.constant 0 : index
    %3 = vector.load %arg4[%c0_3, %c0_4] : memref<1x128xf32, #tpu.memory_space<vmem>>, vector<1x128xf32>
    %4 = vector.broadcast %3 : vector<1x128xf32> to vector<16x128xf32>
    %5 = arith.addf %2, %4 : vector<16x128xf32>
    %c0_5 = arith.constant 0 : index
    %c0_6 = arith.constant 0 : index
    %6 = vector.load %arg5[%c0_5, %c0_6] : memref<16x128xf32, #tpu.memory_space<vmem>>, vector<16x128xf32>
    tpu.vector_store %arg5[%c0_5, %c0_6], %5 {strides = array<i32>} : memref<16x128xf32, #tpu.memory_space<vmem>>, vector<16x128xf32>,
    return
  }
  func.func @transform_0(%arg0: i32, %arg1: i32) -> (i32, i32) {
    %c0_i32 = arith.constant 0 : i32
    %c0_i32_0 = arith.constant 0 : i32
    return %arg1, %c0_i32 : i32, i32
  }
  func.func @transform_1(%arg0: i32, %arg1: i32) -> (i32, i32) {
    %c0_i32 = arith.constant 0 : i32
    %c0_i32_0 = arith.constant 0 : i32
    return %c0_i32, %arg0 : i32, i32
  }
  func.func @transform_2(%arg0: i32, %arg1: i32) -> (i32, i32) {
    %c0_i32 = arith.constant 0 : i32
    %c0_i32_0 = arith.constant 0 : i32
    return %c0_i32, %arg0 : i32, i32
  }
  func.func @transform_3(%arg0: i32, %arg1: i32) -> (i32, i32) {
    %c0_i32 = arith.constant 0 : i32
    return %arg1, %arg0 : i32, i32
  }
}

</mosaic_0001>

<bundles_post_ra>
// kernel: tpu_custom_call.1
= control target key start
LH: loop header
LB: loop body
LE: loop exit
PB: predicated region body
PF: predicated region fallthrough
CT: control target
= control target key end

     0   :  { %8 = vsyncpa [#allocation3], 0  ;;  %s966_s0 = inlined_call_operand.hbm [shape: f32[16,16], index: 0, kind: input, shape index: {}]   ;;  %s967_s1 = inlined_call_operand.hbm [shape: f32[16,384], index: 1, kind: input, shape index: {}]   ;;  %s968_s2 = inlined_call_operand.vmem [shape: f32[1,384], index: 2, kind: input, shape index: {}]   ;;  %s969_s3 = inlined_call_operand.hbm [shape: f32[16,384], index: 3, kind: output, shape index: {}]  }
   0x1   :  { %9 = vsyncpa [#allocation6], 0 }
   0x2   :  { %11 = vsyncpa [#allocation6 + $0x1], 0 }
   0x3   :  { %12 = vsyncpa [#allocation4], 0 }
   0x4   :  { %14 = vsyncpa [#allocation4 + $0x1], 0  ;;  %s745_s12 = smov 0   ;;  %s747_s13 = smov 0  }
   0x5   :  { %s749_s14 = smov 0   ;;  %s751_s15 = smov 0  }
   0x6   :  { %s753_s16 = smov 0   ;;  %s755_s17 = smov 0  }
   0x7 LB: > { %s458_s18 = sadd.s32 4294967295, %s714_s17   ;;  %s459_s19 = sadd.s32 4294967294, %s714_s17   ;;  %s714_s17 = sphi %s755_s17, %s20_s17   ;;  %s710_s16 = sphi %s753_s16, %s996_s16   ;;  %s706_s15 = sphi %s751_s15, %s995_s15   ;;  %s702_s14 = sphi %s749_s14, %s994_s14   ;;  %s698_s13 = sphi %s747_s13, %s993_s13   ;;  %s694_s12 = sphi %s745_s12, %s992_s12  }
   0x8   : > { %p72_p0 = scmp.ne.s32.totalorder %s702_s14, %s698_s13  ;;  %p73_p1 = scmp.eq.s32.totalorder %s714_s17, 0 }
   0x9   : > { %p78_p2 = scmp.ne.s32.totalorder %s698_s13, %s694_s12  ;;  %p782_p3 = scmp.eq.s32.totalorder %s458_s18, 0 }
   0xa   : > { %p786_p4 = por %p73_p1, %p72_p0  ;;  %p130_p5 = scmp.eq.s32.totalorder %s458_s18, 2 }
   0xb   : > { %s977_s20 = scalar_select %p782_p3, 1, 0 }
   0xc   : > { %p792_p6 = por %p782_p3, %p78_p2  ;;  %p136_p7 = scmp.eq.s32.totalorder %s459_s19, 2 }
   0xd   : > { %p796_p8 = por %p130_p5, %p72_p0  ;;  %p460_p9 = scmp.ge.s32.totalorder %s714_s17, 1 }
   0xe   : > { %s979_s22 = scalar_select %p792_p6, 1, 0 }
   0xf   : > { %s980_s23 = scalar_select %p796_p8, 1, 0 }
  0x10   : > { %p801_p10 = por %p136_p7, %p78_p2  ;;  %p143_p11 = scmp.lt.s32.totalorder %s714_s17, 4 }
  0x11   : > { %s716_s26 = smov [#allocation2]   ;;  %p512_p0 = scmp.lt.s32.totalorder %s714_s17, 3 }
  0x12   : > { %s981_s24 = scalar_select %p801_p10, 1, 0 }
  0x13   : > { %p806_p12 = pnand %p460_p9, %p143_p11  ;;  %s158_s27 = sshll.u32 %s716_s26, 4  ;;  %s159_s27 = int_to_ptr.vmem [resolvable:$true] %s158_s27 }
  0x14   : > { %p821_p2 = pnand %p512_p0, %p786_p4  ;;  %s32_s30 = sadd.s32 1, %s710_s16 }
  0x15   : > { %s982_s25 = scalar_select %p806_p12, 1, 0 }
  0x16   : > { %p499_p13 = pneg %p806_p12  ;;  %s570_s6 = scalar_lea.hbm %s966_s0, 256 }
  0x17   : > { %s984_s29 = scalar_select %p821_p2, 1, 0 }
  0x18   : > { %p815_p1 = pnand %p499_p13, %p782_p3  ;;  %p571_p5 = scmp.ne.s32.totalorder %s966_s0, %s570_s6 }
  0x19   : > { %p577_p4 = scmp.lt.u32.totalorder %s570_s6, %s966_s0 }
  0x1a   : > { %p572_p7 = pneg %p815_p1 }
  0x1c   : > { %p573_p9 = pnand %p572_p7, %p571_p5 }
  0x1e   : > { %p574_p11 = pneg %p573_p9 }
  0x20   : > { %p579_p13 = pnand %p577_p4, %p574_p11 }
  0x22   : > { %582 = shalt.err (!%p579_p13)
}
  0x23   : > { %s583_s11 = scalar_lea.vmem %s159_s27, 256  ;;  %p591_p6 = scmp.lt.s32.totalorder %s159_s27, %s159_s27 }
  0x24   : > { %p584_p0 = scmp.ne.s32.totalorder %s159_s27, %s583_s11  ;;  %p592_p3 = scmp.lt.s32.totalorder %s583_s11, %s583_s11 }
  0x26   : > { %p586_p10 = pnand %p584_p0, %p572_p7  ;;  %p593_p12 = por %p592_p3, %p591_p6 }
  0x28   : > { %p587_p8 = pneg %p586_p10 }
  0x2a   : > { %p594_p2 = pnand %p593_p12, %p587_p8 }
  0x2c   : > { %597 = shalt.err (!%p594_p2)
}
  0x2d   : > { %s976_s18 = smov 128   ;;  %s718_s19 = smov 8  }
  0x2e   : > { %502 = dma.hbm_to_vmem [thread:$0]  (!%p815_p1), %s966_s0, 256, %s159_s27, [#allocation3], %s976_s18, %s976_s18, %s718_s19  }
  0x2f   : > { %p34_p10 = scmp.ge.s32.totalorder %s32_s30, 3  ;;  %s65_s4 = sadd.s32 1, %s702_s14 }
  0x30   : > { %s172_s5 = sand.u32 1, %s702_s14   ;;  %s464_s8 = sshll.u32 %s710_s16, 7 }
  0x31   : > { %s998_s30 = smov (%p34_p10, %s32_s30), 0  ;;  %s463_s6 = sshll.u32 %s172_s5, 4 }
  0x32   : > { %s62_s7 = ssub.s32 %s710_s16, %s998_s30  ;;  %s855_s10 = scalar_lea.hbm %s967_s1, %s464_s8 }
  0x33   : > { %p63_p3 = scmp.eq.s32.totalorder %s62_s7, 0  ;;  %s176_s27 = scalar_lea.vmem [#allocation5], %s463_s6 }
  0x34   : > { %s182_s11 = sshll.u32 %s176_s27, 4  ;;  %s862_s26 = scalar_lea.sflag [#allocation6], %s172_s5  ;;  %s860_s11 = int_to_ptr.vmem [resolvable:$true] %s182_s11 }
  0x35   : > { %s858_s21 = scalar_select %p63_p3, %s702_s14, %s65_s4  }
  0x36   : > { %s598_s18 = scalar_lea.hbm %s855_s10, 256  ;;  %p985_p8 = scmp.ne.s32.totalorder %s984_s29, 0 }
  0x37   : > { %p599_p6 = scmp.ne.s32.totalorder %s855_s10, %s598_s18  ;;  %s603_s28 = scalar_lea.hbm %s967_s1, 768 }
  0x38   : > { %p600_p12 = pneg %p985_p8  ;;  %p604_p5 = scmp.lt.u32.totalorder %s855_s10, %s967_s1 }
  0x39   : > { %p605_p7 = scmp.lt.u32.totalorder %s603_s28, %s598_s18  ;;  %p607_p11 = scmp.lt.u32.totalorder %s598_s18, %s855_s10 }
  0x3a   : > { %p601_p1 = pnand %p600_p12, %p599_p6 }
  0x3b   : > { %p606_p9 = por %p605_p7, %p604_p5 }
  0x3c   : > { %p602_p2 = pneg %p601_p1 }
  0x3d   : > { %p608_p4 = por %p607_p11, %p606_p9 }
  0x3f   : > { %p609_p13 = pnand %p608_p4, %p602_p2 }
  0x41   : > { %612 = shalt.err (!%p609_p13)
}
  0x42   : > { %s613_s4 = scalar_lea.vmem %s860_s11, 256  ;;  %s719_s5 = smov [#allocation5]  }
  0x43   : > { %p614_p0 = scmp.ne.s32.totalorder %s860_s11, %s613_s4  ;;  %s618_s27 = sshll.u32 %s719_s5, 4  ;;  %s619_s27 = int_to_ptr.vmem [resolvable:$false] %s618_s27 }
  0x44   : > { %s620_s7 = scalar_lea.vmem %s619_s27, 512  ;;  %p621_p6 = scmp.lt.s32.totalorder %s860_s11, %s619_s27 }
  0x45   : > { %p616_p10 = pnand %p614_p0, %p600_p12  ;;  %p622_p1 = scmp.lt.s32.totalorder %s620_s7, %s613_s4 }
  0x47   : > { %p617_p3 = pneg %p616_p10  ;;  %p623_p5 = por %p622_p1, %p621_p6 }
  0x49   : > { %p624_p7 = pnand %p623_p5, %p617_p3 }
  0x4b   : > { %627 = shalt.err (!%p624_p7)
}
  0x4c   : > { %s720_s18 = smov 384   ;;  %s986_s8 = smov 128  }
  0x4d   : > { %506 = dma.hbm_to_vmem [thread:$0]  (!%p985_p8), %s855_s10, 256, %s860_s11, %s862_s26, %s720_s18, %s986_s8, %s718_s19  }
  0x4e   : > { %p987_p12 = scmp.ne.s32.totalorder %s982_s25, 0 }
  0x4f   : > { %p988_p2 = scmp.ne.s32.totalorder (!%p987_p12), %s977_s20, 0 }
  0x50   : > { %200 = sbr.rel (%p987_p12) target bundleno = 330 (0x14a), region = 32 }
  0x57   : > { %681 = dma.done.wait (%p988_p2), [#allocation3], 256  }
  0x58   : > { %683 = vsyncadd (%p988_p2), [#allocation3], 4294967040  ;;  %s899_s28 = sand.u32 1, %s698_s13   ;;  %p989_p9 = scmp.ne.s32.totalorder %s979_s22, 0 }
  0x59   : > { %s467_s29 = sshll.u32 %s899_s28, 4  ;;  %s207_s6 = scalar_lea.sflag [#allocation6], %s899_s28 }
  0x5a   : > { %s210_s9 = scalar_lea.vmem [#allocation5], %s467_s29 }
  0x5b   : > { %685 = dma.done.wait (%p989_p9), %s207_s6, 256  }
  0x5c   : > { %687 = vsyncadd (%p989_p9), %s207_s6, 4294967040  ;;  %vm252_vm0 = vcmask 130048   ;;  %v243_v0 = vld [vmem:[%s210_s9] sm:$0xff]  ;;  %v244_v1 = vld [vmem:[%s210_s9 + $0x8] sm:$0xff]  ;;  %p237_p8 = scmp.lt.s32.totalorder %s706_s15, 2  ;;  %s235_s10 = scalar_lea.vmem [#allocation7], %s467_s29 }
  0x5d   : > { %v241_v2 = vld [vmem:[#allocation2] sm:$0xff]  ;;  %v487_v3 = vpack.c.bf16 %v244_v1, %v243_v0  ;;  %v242_v4 = vld [vmem:[#allocation2 + $0x8] sm:$0xff]  ;;  %s352_s11 = sshll.u32 %s235_s10, 4  ;;  %s473_s26 = sshll.u32 %s706_s15, 7  ;;  %s913_s11 = int_to_ptr.vmem [resolvable:$true] %s352_s11 }
  0x5e   : > { %484 = vmatprep.mubr.msk.f32.mxu0 %vm252_vm0, %v241_v2  ;;  %s238_s20 = scalar_select %p237_p8, %s706_s15, 2 }
  0x5f   : > { %488 = vmatprep.subr.bf16.mxu0 %v487_v3  ;;  %s918_s27 = scalar_lea.hbm %s969_s3, %s473_s26  ;;  %s337_s7 = scalar_lea.sflag [#allocation4], %s899_s28 }
  0x60   : > { %490 = vmatpush3.bf16.msra.mxu0 %v487_v3  ;;  %s239_s22 = scalar_lea.vmem %s968_s2, %s238_s20  ;;  %s628_s18 = scalar_lea.vmem %s913_s11, 256 }
  0x61   : > { %v469_v5 = vld [vmem:[%s239_s22] ss:$0 sm:$0xff]  ;;  %p629_p11 = scmp.ne.s32.totalorder %s913_s11, %s628_s18  ;;  %p990_p4 = scmp.ne.s32.totalorder %s980_s23, 0 }
  0x62   : > { %s721_s15 = smov [#allocation7]  }
  0x63   : > { %485 = vmatmul.mubr.msk.f32.vlgmr.msra.gmra.mrb[0].mxu0 %vm252_vm0, %v242_v4  ;;  %p630_p13 = pnand %p629_p11, %p990_p4  ;;  %s632_s8 = sshll.u32 %s721_s15, 4  ;;  %s633_s8 = int_to_ptr.vmem [resolvable:$false] %s632_s8 }
  0x64   : > { %s634_s29 = scalar_lea.vmem %s633_s8, 512  ;;  %p635_p10 = scmp.lt.s32.totalorder %s913_s11, %s633_s8 }
  0x65   : > { %p631_p0 = pneg %p630_p13  ;;  %p636_p3 = scmp.lt.s32.totalorder %s634_s29, %s628_s18 }
  0x67   : > { %p637_p6 = por %p636_p3, %p635_p10 }
  0x69   : > { %p638_p1 = pnand %p637_p6, %p631_p0 }
 0x136   : > { %v486_v6 = vpop.f32.mrb[0].mxu0 }
 0x137   : > { %v331_v7 = vadd.f32 %v486_v6, %v469_v5  ;;  %v325_v8 = vpop.f32.mrb[1].mxu0 }
 0x138   : > { %v326_v9 = vadd.f32 %v469_v5, %v325_v8 }
 0x139   : > { %335 = vst [vmem:[%s235_s10 + $0x8] sm:$0xff] %v331_v7 }
 0x13a   : > { %334 = vst [vmem:[%s235_s10] sm:$0xff] %v326_v9 }
 0x13b   : > { %641 = shalt.err (!%p638_p1)
}
 0x13c   : > { %s642_s6 = scalar_lea.hbm %s918_s27, 256  ;;  %s646_s25 = scalar_lea.hbm %s969_s3, 768 }
 0x13d   : > { %p643_p5 = scmp.ne.s32.totalorder %s918_s27, %s642_s6  ;;  %p647_p2 = scmp.lt.u32.totalorder %s918_s27, %s969_s3 }
 0x13e   : > { %p648_p9 = scmp.lt.u32.totalorder %s646_s25, %s642_s6  ;;  %p650_p11 = scmp.lt.u32.totalorder %s642_s6, %s918_s27 }
 0x13f   : > { %p644_p7 = pnand %p643_p5, %p990_p4 }
 0x140   : > { %p649_p8 = por %p648_p9, %p647_p2 }
 0x141   : > { %p645_p12 = pneg %p644_p7 }
 0x142   : > { %p651_p13 = por %p650_p11, %p649_p8 }
 0x144   : > { %p652_p0 = pnand %p651_p13, %p645_p12 }
 0x146   : > { %655 = shalt.err (!%p652_p0)
}
 0x147   : > { %s722_s10 = smov 128   ;;  %s723_s26 = smov 384  }
 0x148   : > { %s724_s4 = smov 8  }
 0x149   : > { %497 = dma.vmem_to_hbm [thread:$0]  (%p990_p4), %s913_s11, 256, %s918_s27, %s337_s7, %s722_s10, %s723_s26, %s724_s4  }
 0x14a PF: > { %p514_p10 = scmp.ge.s32.totalorder %s714_s17, 2  ;;  %s367_s5 = sand.u32 1, %s694_s12  }
 0x14b   : > { %p991_p3 = scmp.ne.s32.totalorder %s981_s24, 0  ;;  %s368_s18 = scalar_lea.sflag [#allocation4], %s367_s5 }
 0x14d   : > { %p508_p6 = pnand %p514_p10, %p991_p3 }
 0x14f   : > { %689 = dma.done.wait (!%p508_p6), %s368_s18, 256  }
 0x150   : > { %691 = vsyncadd (!%p508_p6), %s368_s18, 4294967040  ;;  %s20_s17 = sadd.s32 1, %s714_s17   ;;  %s992_s12 = smov %s698_s13 }
 0x151   : > { %p17_p1 = scmp.ge.s32.totalorder %s20_s17, 5   ;;  %s993_s13 = smov %s702_s14 }
 0x152   : > { %s994_s14 = smov %s858_s21  ;;  %s995_s15 = smov %s710_s16 }
 0x153   : > { %s996_s16 = smov %s998_s30  ;;  %19 = sbr.rel (!%p17_p1) target bundleno = 7 (0x7), region = 86 }
 0x15a   :  { %373 = vsyncpa [#allocation3], 1 }
 0x15b   :  { %375 = vsyncpa [#allocation3 + $0x1], 1 }
 0x15c   :  { %376 = vsyncpa [#allocation6], 1 }
 0x15d   :  { %378 = vsyncpa [#allocation6 + $0x1], 1 }
 0x15e   :  { %379 = vsyncpa [#allocation4], 1 }
 0x15f   :  { %381 = vsyncpa [#allocation4 + $0x1], 1 }

</bundles_post_ra>
